<compile_context>
chip_gen: v7x
topology: tpu7x:2x2x1
jax: 0.10.0
libtpu: 0.0.40
codegen_flags: <defaults>
</compile_context>

<pallas_src>
import math

import jax
import jax.numpy as jnp
from jax.experimental import pallas as pl
from jax.experimental.pallas import tpu as pltpu

_LANE = 128
_SUBLANE = 8


def _round_up(x, m):
    return ((x + m - 1) // m) * m


def _int_power(p, k):
    """p ** k for a small non-negative integer k via repeated multiplication."""
    if k == 0:
        return jnp.ones_like(p)
    result = None
    base = p
    while k:
        if k & 1:
            result = base if result is None else result * base
        k >>= 1
        if k:
            base = base * base
    return result


def _make_focal_kernel(gamma, width, tile_rows, tiles_per_split,
                       valid_elems, covered_rows, binary_targets):
    gamma = float(gamma)
    int_gamma = gamma.is_integer() and 0.0 <= gamma <= 16.0
    has_padding = covered_rows * width > valid_elems

    def focal_kernel(x_ref, t_ref, acc_ref):
        split = pl.program_id(0)
        step = pl.program_id(1)

        @pl.when(step == 0)
        def _init():
            acc_ref[...] = jnp.zeros_like(acc_ref)

        x = x_ref[...].astype(jnp.float32)
        t = t_ref[...].astype(jnp.float32)

        # Stable BCE-with-logits:  max(x, 0) - x*t + log1p(exp(-|x|))
        e_x = jnp.exp(-jnp.abs(x))
        bce = jnp.maximum(x, 0.0) - x * t + jnp.log1p(e_x)

        # Focal weight = sigmoid(z) ** gamma with z = -x * (2t - 1).
        z = -x * (t * 2.0 - 1.0)
        # For hard {0,1} targets |z| == |x|, so the exp can be shared.
        e_z = e_x if binary_targets else jnp.exp(-jnp.abs(z))

        if int_gamma:
            # sigmoid(z) = select(z>=0, 1, e_z) / (1 + e_z); integer power by mult.
            p = jnp.where(z >= 0.0, 1.0, e_z) / (1.0 + e_z)
            w = _int_power(p, int(gamma))
        else:
            invprobs = jnp.minimum(z, 0.0) - jnp.log1p(e_z)
            w = jnp.exp(invprobs * gamma)

        loss = w * bce

        if has_padding:
            # Discard wrapper zero-padding and stale edge-block rows.  Keep this
            # a select (not a multiply) so NaN/Inf in padded rows vanish.
            g = split * tiles_per_split + step          # logical (unclamped) block
            row = jax.lax.broadcasted_iota(jnp.int32, loss.shape, 0) + g * tile_rows
            col = jax.lax.broadcasted_iota(jnp.int32, loss.shape, 1)
            loss = jnp.where(row * width + col < valid_elems, loss, 0.0)

        # vreg-wise accumulation: (T, W) -> (T//8, 8, W) -> (8, W); no per-step
        # cross-sublane reduce, and 8*W lane-partials preserve accuracy.
        acc_ref[...] += jnp.sum(loss.reshape(-1, _SUBLANE, width), axis=0)

    return focal_kernel


def focal_loss(inp, target, gamma=2.0, assume_binary_targets=False,
               block_rows=None):
    """Pallas TPU implementation of FocalLoss.forward (loss.sum(1).mean())."""
    if target.ndim == 1:
        target = target.reshape(target.shape[0], -1)
    if target.shape != inp.shape:
        raise ValueError(
            "Target size ({}) must be the same as input size ({})".format(
                target.shape, inp.shape))

    total = int(math.prod(inp.shape))
    denom = total // inp.shape[1]        # loss.sum(1).mean() == sum(loss) / denom

    # ---------------- lane-dense 2-D layout ----------------
    last = inp.shape[-1]
    if last % _LANE == 0 and total // last >= _SUBLANE:
        # Trailing dim already lane-aligned: collapse leading dims (layout-free).
        width = last
        rows = total // last
        x2 = inp.reshape(rows, width)
        t2 = target.reshape(rows, width)
    else:
        # Flatten to a 1-D stream and re-block as (rows, 128); padded tail is
        # masked inside the kernel.
        width = _LANE
        padded = max(_round_up(total, _LANE), _SUBLANE * _LANE)
        x2 = inp.reshape(-1)
        t2 = target.reshape(-1)
        if padded != total:
            x2 = jnp.pad(x2, (0, padded - total))
            t2 = jnp.pad(t2, (0, padded - total))
        rows = padded // _LANE
        x2 = x2.reshape(rows, width)
        t2 = t2.reshape(rows, width)

    # ---------------- byte-budget tile sizing (per generation) ----------------
    try:
        vmem_cap = int(getattr(pltpu.get_tpu_info(), "vmem_capacity_bytes",
                               64 << 20))
    except Exception:                     # conservative fallback (treat as v7x)
        vmem_cap = 64 << 20
    big_vmem = vmem_cap >= (100 << 20)                      # v5e / v6e (128 MiB)
    block_budget = (16 << 20) if big_vmem else (8 << 20)    # x + t bytes per step

    itemsz = inp.dtype.itemsize + target.dtype.itemsize
    tile_rows = block_budget // (width * itemsz)
    if block_rows is not None:
        tile_rows = int(block_rows)
    tile_rows = max(_SUBLANE, (tile_rows // _SUBLANE) * _SUBLANE)
    tile_rows = min(tile_rows, max(_SUBLANE, (rows // _SUBLANE) * _SUBLANE))

    num_blocks = pl.cdiv(rows, tile_rows)
    n_splits = 2 if num_blocks >= 2 else 1      # feeds both TensorCores on v7x
    tiles_per_split = pl.cdiv(num_blocks, n_splits)
    covered_rows = n_splits * tiles_per_split * tile_rows

    def in_map(s, i, _nb=num_blocks, _tps=tiles_per_split):
        # Clamp the overshoot block in-bounds; its contribution is masked out.
        return (jnp.minimum(s * _tps + i, _nb - 1), 0)

    kernel = _make_focal_kernel(gamma, width, tile_rows, tiles_per_split,
                                total, covered_rows, bool(assume_binary_targets))

    in_block_bytes = tile_rows * width * itemsz
    vmem_need = 2 * in_block_bytes + 2 * _SUBLANE * width * 4 + (4 << 20)
    vmem_cap_budget = (100 << 20) if big_vmem else int(vmem_cap * 3 // 4)
    vmem_limit = int(min(max(vmem_need, 16 << 20), vmem_cap_budget))

    n_trans = 2 if assume_binary_targets else 3
    cost = pl.CostEstimate(
        flops=16 * total,
        transcendentals=n_trans * total,
        bytes_accessed=total * itemsz + n_splits * _SUBLANE * width * 4,
    )

    partials = pl.pallas_call(
        kernel,
        out_shape=jax.ShapeDtypeStruct((n_splits, _SUBLANE, width), jnp.float32),
        grid_spec=pltpu.PrefetchScalarGridSpec(
            num_scalar_prefetch=0,
            grid=(n_splits, tiles_per_split),
            in_specs=[
                pl.BlockSpec((tile_rows, width), in_map),
                pl.BlockSpec((tile_rows, width), in_map),
            ],
            out_specs=pl.BlockSpec((None, _SUBLANE, width), lambda s, i: (s, 0, 0)),
        ),
        compiler_params=pltpu.CompilerParams(
            dimension_semantics=("parallel", "arbitrary"),
            vmem_limit_bytes=vmem_limit,
        ),
        cost_estimate=cost,
    )(x2, t2)

    # Tiny cross-lane reduction + mean done in the wrapper (2 * 8 * W values).
    return jnp.sum(partials) / jnp.float32(denom)


def focal_loss_ref(inp, target, gamma=2.0):
    """Pure-JAX reference (mirrors the PyTorch forward exactly)."""
    if target.ndim == 1:
        target = target.reshape(target.shape[0], -1)
    x = inp.astype(jnp.float32)
    t = target.astype(jnp.float32)
    max_val = jnp.maximum(-x, 0.0)
    loss = x - x * t + max_val + jnp.log(jnp.exp(-max_val) + jnp.exp(-x - max_val))
    invprobs = jax.nn.log_sigmoid(-x * (t * 2.0 - 1.0))
    loss = jnp.exp(invprobs * gamma) * loss
    return jnp.mean(jnp.sum(loss, axis=1))


if __name__ == "__main__":
    key = jax.random.PRNGKey(0)
    ks = jax.random.split(key, 10)

    def check(out, ref, name):
        assert jnp.allclose(out, ref, rtol=1e-5, atol=1e-5), (name, out, ref)

    # Case 1: small unaligned C -> lane-dense flattened layout with masked pad.
    x1 = jax.random.normal(ks[0], (8, 10), dtype=jnp.float32) * 2.0
    t1 = jax.random.bernoulli(ks[1], 0.3, (8, 10)).astype(jnp.float32)
    out1 = jax.block_until_ready(focal_loss(x1, t1, gamma=2.0))
    check(out1, focal_loss_ref(x1, t1, 2.0), "case1")

    # Case 2: aligned C, forced multi-block grid + 2-way split + clamped
    # overshoot block (exercises the megacore path and the masking).
    x2 = jax.random.normal(ks[2], (20, 256), dtype=jnp.float32) * 2.0
    t2 = jax.random.bernoulli(ks[3], 0.3, (20, 256)).astype(jnp.float32)
    out2 = jax.block_until_ready(focal_loss(x2, t2, gamma=2.0, block_rows=8))
    check(out2, focal_loss_ref(x2, t2, 2.0), "case2")

    # Case 3: non-integer gamma (exp(gamma * logsigmoid) path) with soft targets.
    x3 = jax.random.normal(ks[4], (8, 128), dtype=jnp.float32)
    t3 = jax.random.uniform(ks[5], (8, 128), dtype=jnp.float32)
    out3 = jax.block_until_ready(focal_loss(x3, t3, gamma=1.5))
    check(out3, focal_loss_ref(x3, t3, 1.5), "case3")

    # Case 4: opt-in binary-target fast path (shared exp -> 2 transcendentals).
    x4 = jax.random.normal(ks[6], (16, 64), dtype=jnp.float32)
    t4 = jax.random.bernoulli(ks[7], 0.5, (16, 64)).astype(jnp.float32)
    out4 = jax.block_until_ready(
        focal_loss(x4, t4, gamma=2.0, assume_binary_targets=True))
    check(out4, focal_loss_ref(x4, t4, 2.0), "case4")

    # Case 5: 1-D target (PyTorch target.view(N, -1) path).
    x5 = jax.random.normal(ks[8], (12, 1), dtype=jnp.float32)
    t5 = jax.random.bernoulli(ks[9], 0.4, (12,)).astype(jnp.float32)
    out5 = jax.block_until_ready(focal_loss(x5, t5, gamma=2.0))
    check(out5, focal_loss_ref(x5, t5, 2.0), "case5")

    print("KERNEL_OK")
</pallas_src>

<mosaic_0001>
module attributes {stable_mosaic.version = 11 : i64} {
  func.func @focal_kernel(%arg0: i32, %arg1: i32, %arg2: memref<8x128xf32, #tpu.memory_space<vmem>>, %arg3: memref<8x128xf32, #tpu.memory_space<vmem>>, %arg4: memref<1x8x128xf32, #tpu.memory_space<vmem>>) attributes {dimension_semantics = [#tpu.dimension_semantics<parallel>, #tpu.dimension_semantics<arbitrary>], iteration_bounds = array<i64: 1, 1>, scalar_prefetch = 0 : i64, scratch_operands = 0 : i64, tpu.core_type = #tpu.core_type<tc>, window_params = [{transform_indices = @transform_0, window_bounds = array<i64: 8, 128>}, {transform_indices = @transform_1, window_bounds = array<i64: 8, 128>}, {transform_indices = @transform_2, window_bounds = array<i64: 1, 8, 128>}]} {
    %c0_i32 = arith.constant 0 : i32
    %0 = arith.cmpi eq, %arg1, %c0_i32 : i32
    %1 = arith.extui %0 : i1 to i32
    %c0_i32_0 = arith.constant 0 : i32
    %2 = arith.cmpi ne, %1, %c0_i32_0 : i32
    scf.if %2 {
      %cst_20 = arith.constant 0.000000e+00 : f32
      %57 = vector.broadcast %cst_20 : f32 to vector<8x128xf32>
      %c0_21 = arith.constant 0 : index
      %c0_22 = arith.constant 0 : index
      %c0_23 = arith.constant 0 : index
      %58 = vector.load %arg4[%c0_21, %c0_22, %c0_23] : memref<1x8x128xf32, #tpu.memory_space<vmem>>, vector<1x8x128xf32>
      %59 = vector.shape_cast %58 : vector<1x8x128xf32> to vector<8x128xf32>
      %60 = vector.shape_cast %57 : vector<8x128xf32> to vector<1x8x128xf32>
      tpu.vector_store %arg4[%c0_21, %c0_22, %c0_23], %60 {strides = array<i32>} : memref<1x8x128xf32, #tpu.memory_space<vmem>>, vector<1x8x128xf32>,
    } else {
    }
    %c0 = arith.constant 0 : index
    %c0_1 = arith.constant 0 : index
    %3 = vector.load %arg2[%c0, %c0_1] : memref<8x128xf32, #tpu.memory_space<vmem>>, vector<8x128xf32>
    %c0_2 = arith.constant 0 : index
    %c0_3 = arith.constant 0 : index
    %4 = vector.load %arg3[%c0_2, %c0_3] : memref<8x128xf32, #tpu.memory_space<vmem>>, vector<8x128xf32>
    %5 = math.absf %3 : vector<8x128xf32>
    %cst = arith.constant 0.000000e+00 : f32
    %6 = vector.broadcast %cst : f32 to vector<8x128xf32>
    %7 = arith.subf %6, %5 : vector<8x128xf32>
    %8 = math.exp %7 : vector<8x128xf32>
    %cst_4 = arith.constant 0.000000e+00 : f32
    %9 = vector.broadcast %cst_4 : f32 to vector<8x128xf32>
    %10 = arith.maximumf %3, %9 : vector<8x128xf32>
    %11 = arith.mulf %3, %4 : vector<8x128xf32>
    %12 = arith.subf %10, %11 : vector<8x128xf32>
    %13 = math.log1p %8 : vector<8x128xf32>
    %14 = arith.addf %12, %13 : vector<8x128xf32>
    %cst_5 = arith.constant 0.000000e+00 : f32
    %15 = vector.broadcast %cst_5 : f32 to vector<8x128xf32>
    %16 = arith.subf %15, %3 : vector<8x128xf32>
    %cst_6 = arith.constant 2.000000e+00 : f32
    %17 = vector.broadcast %cst_6 : f32 to vector<8x128xf32>
    %18 = arith.mulf %4, %17 : vector<8x128xf32>
    %cst_7 = arith.constant 1.000000e+00 : f32
    %19 = vector.broadcast %cst_7 : f32 to vector<8x128xf32>
    %20 = arith.subf %18, %19 : vector<8x128xf32>
    %21 = arith.mulf %16, %20 : vector<8x128xf32>
    %22 = math.absf %21 : vector<8x128xf32>
    %cst_8 = arith.constant 0.000000e+00 : f32
    %23 = vector.broadcast %cst_8 : f32 to vector<8x128xf32>
    %24 = arith.subf %23, %22 : vector<8x128xf32>
    %25 = math.exp %24 : vector<8x128xf32>
    %cst_9 = arith.constant 0.000000e+00 : f32
    %26 = vector.broadcast %cst_9 : f32 to vector<8x128xf32>
    %27 = arith.cmpf oge, %21, %26 : vector<8x128xf32>
    %cst_10 = arith.constant 1.000000e+00 : f32
    %28 = vector.broadcast %cst_10 : f32 to vector<8x128xf32>
    %29 = arith.select %27, %28, %25 : vector<8x128xi1>, vector<8x128xf32>
    %cst_11 = arith.constant 1.000000e+00 : f32
    %30 = vector.broadcast %cst_11 : f32 to vector<8x128xf32>
    %31 = arith.addf %30, %25 : vector<8x128xf32>
    %32 = arith.divf %29, %31 : vector<8x128xf32>
    %33 = arith.mulf %32, %32 : vector<8x128xf32>
    %34 = arith.mulf %33, %14 : vector<8x128xf32>
    %c1_i32 = arith.constant 1 : i32
    %35 = arith.muli %arg0, %c1_i32 : i32
    %36 = arith.addi %35, %arg1 : i32
    %37 = tpu.iota {dimensions = array<i32: 0>} : vector<8x128xi32>
    %c8_i32 = arith.constant 8 : i32
    %38 = arith.muli %36, %c8_i32 : i32
    %39 = vector.broadcast %38 : i32 to vector<8x128xi32>
    %40 = arith.addi %37, %39 : vector<8x128xi32>
    %41 = tpu.iota {dimensions = array<i32: 1>} : vector<8x128xi32>
    %c128_i32 = arith.constant 128 : i32
    %42 = vector.broadcast %c128_i32 : i32 to vector<8x128xi32>
    %43 = arith.muli %40, %42 : vector<8x128xi32>
    %44 = arith.addi %43, %41 : vector<8x128xi32>
    %c80_i32 = arith.constant 80 : i32
    %45 = vector.broadcast %c80_i32 : i32 to vector<8x128xi32>
    %46 = arith.cmpi slt, %44, %45 : vector<8x128xi32>
    %cst_12 = arith.constant 0.000000e+00 : f32
    %47 = vector.broadcast %cst_12 : f32 to vector<8x128xf32>
    %48 = arith.select %46, %34, %47 : vector<8x128xi1>, vector<8x128xf32>
    %c0_13 = arith.constant 0 : index
    %c0_14 = arith.constant 0 : index
    %c0_15 = arith.constant 0 : index
    %49 = vector.load %arg4[%c0_13, %c0_14, %c0_15] : memref<1x8x128xf32, #tpu.memory_space<vmem>>, vector<1x8x128xf32>
    %50 = vector.shape_cast %49 : vector<1x8x128xf32> to vector<8x128xf32>
    %51 = vector.shape_cast %48 : vector<8x128xf32> to vector<1x8x128xf32>
    %cst_16 = arith.constant dense<0.000000e+00> : vector<8x128xf32>
    %52 = vector.multi_reduction <add>, %51, %cst_16 [0] : vector<1x8x128xf32> to vector<8x128xf32>
    %53 = arith.addf %50, %52 : vector<8x128xf32>
    %c0_17 = arith.constant 0 : index
    %c0_18 = arith.constant 0 : index
    %c0_19 = arith.constant 0 : index
    %54 = vector.load %arg4[%c0_17, %c0_18, %c0_19] : memref<1x8x128xf32, #tpu.memory_space<vmem>>, vector<1x8x128xf32>
    %55 = vector.shape_cast %54 : vector<1x8x128xf32> to vector<8x128xf32>
    %56 = vector.shape_cast %53 : vector<8x128xf32> to vector<1x8x128xf32>
    tpu.vector_store %arg4[%c0_17, %c0_18, %c0_19], %56 {strides = array<i32>} : memref<1x8x128xf32, #tpu.memory_space<vmem>>, vector<1x8x128xf32>,
    return
  }
  func.func @transform_0(%arg0: i32, %arg1: i32) -> (i32, i32) {
    %c1_i32 = arith.constant 1 : i32
    %0 = arith.muli %arg0, %c1_i32 : i32
    %1 = arith.addi %0, %arg1 : i32
    %c0_i32 = arith.constant 0 : i32
    %2 = arith.minsi %1, %c0_i32 : i32
    %c0_i32_0 = arith.constant 0 : i32
    %c0_i32_1 = arith.constant 0 : i32
    return %2, %c0_i32_0 : i32, i32
  }
  func.func @transform_1(%arg0: i32, %arg1: i32) -> (i32, i32) {
    %c1_i32 = arith.constant 1 : i32
    %0 = arith.muli %arg0, %c1_i32 : i32
    %1 = arith.addi %0, %arg1 : i32
    %c0_i32 = arith.constant 0 : i32
    %2 = arith.minsi %1, %c0_i32 : i32
    %c0_i32_0 = arith.constant 0 : i32
    %c0_i32_1 = arith.constant 0 : i32
    return %2, %c0_i32_0 : i32, i32
  }
  func.func @transform_2(%arg0: i32, %arg1: i32) -> (i32, i32, i32) {
    %c0_i32 = arith.constant 0 : i32
    %c0_i32_0 = arith.constant 0 : i32
    %c0_i32_1 = arith.constant 0 : i32
    return %arg0, %c0_i32, %c0_i32_0 : i32, i32, i32
  }
}

</mosaic_0001>

<bundles_post_ra>
// kernel: tpu_custom_call.1
= control target key start
LH: loop header
LB: loop body
LE: loop exit
PB: predicated region body
PF: predicated region fallthrough
CT: control target
= control target key end

     0   :  { %7 = vsyncpa [#allocation3], 0  ;;  %s266_s0 = inlined_call_operand.hbm [shape: f32[8,128], index: 0, kind: input, shape index: {}]   ;;  %s267_s1 = inlined_call_operand.hbm [shape: f32[8,128], index: 1, kind: input, shape index: {}]   ;;  %s268_s2 = inlined_call_operand.hbm [shape: f32[1,8,128], index: 2, kind: output, shape index: {}]  }
   0x1   :  { %8 = vsyncpa [#allocation6], 0 }
   0x2   :  { %9 = vsyncpa [#allocation4], 0  ;;  %s212_s9 = smov [#allocation2]   ;;  %s213_s11 = smov [#allocation5]  }
   0x3   :  { %s21_s10 = sshll.u32 %s212_s9, 4  ;;  %s36_s12 = sshll.u32 %s213_s11, 4  ;;  %s22_s10 = int_to_ptr.vmem [resolvable:$true] %s21_s10  ;;  %s37_s12 = int_to_ptr.vmem [resolvable:$true] %s36_s12 }
   0x4   :  { %s140_s15 = scalar_lea.hbm %s266_s0, 128 }
   0x5   :  { %p141_p0 = scmp.ne.s32.totalorder %s266_s0, %s140_s15  ;;  %p144_p1 = scmp.lt.u32.totalorder %s140_s15, %s266_s0 }
   0x7   :  { %p146_p2 = pnand %p144_p1, %p141_p0 }
   0x9   :  { %149 = shalt.err (!%p146_p2)
}
   0xa   :  { %s150_s20 = scalar_lea.vmem %s22_s10, 128  ;;  %p155_p4 = scmp.lt.s32.totalorder %s22_s10, %s22_s10 }
   0xb   :  { %p151_p3 = scmp.ne.s32.totalorder %s22_s10, %s150_s20  ;;  %p156_p5 = scmp.lt.s32.totalorder %s150_s20, %s150_s20 }
   0xd   :  { %p157_p6 = por %p156_p5, %p155_p4 }
   0xf   :  { %p158_p7 = pnand %p157_p6, %p151_p3 }
  0x11   :  { %161 = shalt.err (!%p158_p7)
}
  0x12   :  { %24 = dma.hbm_to_vmem [thread:$0]  %s266_s0, 128, %s22_s10, [#allocation3]  }
  0x13   :  { %s162_s25 = scalar_lea.hbm %s267_s1, 128 }
  0x14   :  { %p163_p8 = scmp.ne.s32.totalorder %s267_s1, %s162_s25  ;;  %p166_p9 = scmp.lt.u32.totalorder %s162_s25, %s267_s1 }
  0x16   :  { %p168_p10 = pnand %p166_p9, %p163_p8 }
  0x18   :  { %171 = shalt.err (!%p168_p10)
}
  0x19   :  { %s172_s30 = scalar_lea.vmem %s37_s12, 128  ;;  %p177_p12 = scmp.lt.s32.totalorder %s37_s12, %s37_s12 }
  0x1a   :  { %p173_p11 = scmp.ne.s32.totalorder %s37_s12, %s172_s30  ;;  %p178_p13 = scmp.lt.s32.totalorder %s172_s30, %s172_s30 }
  0x1c   :  { %p179_p0 = por %p178_p13, %p177_p12 }
  0x1e   :  { %p180_p1 = pnand %p179_p0, %p173_p11 }
  0x20   :  { %183 = shalt.err (!%p180_p1)
}
  0x21   :  { %39 = dma.hbm_to_vmem [thread:$0]  %s267_s1, 128, %s37_s12, [#allocation6]  }
  0x22   :  { %206 = dma.done.wait [#allocation3], 128  }
  0x23   :  { %207 = vsyncadd [#allocation3], 4294967168 }
  0x24   :  { %208 = dma.done.wait [#allocation6], 128  }
  0x25   :  { %209 = vsyncadd [#allocation6], 4294967168  ;;  %v57_v0 = vld [vmem:[#allocation2] sm:$0xff]  ;;  %v58_v1 = vld [vmem:[#allocation5] sm:$0xff]  ;;  %v92_v17 = vlaneseq  ;;  %s214_s1 = smov [#allocation7]  }
  0x26   :  { %v59_v2 = vand.u32 2147483647, %v57_v0  ;;  %v76_v3 = vsub.f32 0.0, %v57_v0  ;;  %v77_v4 = vmul.f32 2.0, %v58_v1  ;;  %v63_v22 = vmax.f32 %v57_v0, 0.0  ;;  %s113_s4 = sshll.u32 %s214_s1, 4  ;;  %s114_s4 = int_to_ptr.vmem [resolvable:$true] %s113_s4 }
  0x27   :  { %v93_v20 = vshrl.u32 %v92_v17, 7  ;;  %v64_v23 = vmul.f32 %v58_v1, %v57_v0  ;;  %v98_v26 = vand.u32 127, %v92_v17  ;;  %s184_s5 = scalar_lea.vmem %s114_s4, 128  ;;  %p189_p3 = scmp.lt.s32.totalorder %s114_s4, %s114_s4 }
  0x28   :  { %v60_v5 = vsub.f32 0.0, %v59_v2  ;;  %v127_v6 = vadd.f32 -1.0, %v77_v4  ;;  %p185_p2 = scmp.ne.s32.totalorder %s114_s4, %s184_s5  ;;  %p190_p4 = scmp.lt.s32.totalorder %s184_s5, %s184_s5 }
  0x29   :  { %v99_v27 = vmul.u32 128, %v93_v20  ;;  %v65_v28 = vsub.f32 %v63_v22, %v64_v23 }
  0x2a   :  { %v61_v7 = vmul.f32 1.442695, %v60_v5  ;;  %v79_v8 = vmul.f32 %v127_v6, %v76_v3  ;;  %p191_p5 = por %p190_p4, %p189_p3 }
  0x2b   :  { %v100_v32 = vadd.s32 %v99_v27, %v98_v26 }
  0x2c   :  { %132 = vpow2.f32 %v61_v7  ;;  %v80_v9 = vand.u32 2147483647, %v79_v8  ;;  %vm84_vm1 = vcmp.ge.f32.partialorder %v79_v8, 0.0  ;;  %p192_p6 = pnand %p191_p5, %p185_p2 }
  0x2d   :  { %vm101_vm2 = vcmp.lt.s32.totalorder %v100_v32, 80 }
  0x2e   :  { %v81_v10 = vsub.f32 0.0, %v80_v9 }
  0x30   :  { %v82_v11 = vmul.f32 1.442695, %v81_v10 }
  0x32   :  { %134 = vpow2.f32 %v82_v11 }
  0x36   :  { %v133_v12 = vpop.eup %132 }
  0x37   :  { %v66_v13 = vadd.f32 1.0, %v133_v12  ;;  %v69_v14 = vmul.f32 -0.5, %v133_v12  ;;  %v72_v19 = vand.u32 2147483647, %v133_v12 }
  0x39   :  { %136 = vlog2.f32 %v66_v13  ;;  %v70_v18 = vadd.f32 1.0, %v69_v14  ;;  %vm73_vm0 = vcmp.lt.f32.partialorder %v72_v19, 0.0004427343 }
  0x3b   :  { %v71_v25 = vmul.f32 %v133_v12, %v70_v18 }
  0x3c   :  { %v135_v15 = vpop.eup %134 }
  0x3d   :  { %v86_v16 = vadd.f32 1.0, %v135_v15  ;;  %v85_v30 = vsel %vm84_vm1, 1.0, %v135_v15 }
  0x3f   :  { %138 = vrcp.f32 %v86_v16 }
  0x43   :  { %v137_v21 = vpop.eup %136 }
  0x44   :  { %v68_v24 = vmul.f32 0.6931472, %v137_v21 }
  0x46   :  { %v74_v29 = vsel %vm73_vm0, %v71_v25, %v68_v24 }
  0x47   :  { %v75_v33 = vadd.f32 %v74_v29, %v65_v28 }
  0x49   :  { %v139_v31 = vpop.eup %138 }
  0x4a   :  { %v88_v34 = vmul.f32 %v139_v31, %v85_v30 }
  0x4c   :  { %v89_v35 = vmul.f32 %v88_v34, %v88_v34 }
  0x4e   :  { %v90_v36 = vmul.f32 %v89_v35, %v75_v33 }
  0x50   :  { %v102_v37 = vsel %vm101_vm2, %v90_v36, 0.0 }
  0x51   :  { %106 = vst [vmem:[#allocation7] sm:$0xff] %v102_v37 }
  0x52   :  { %195 = shalt.err (!%p192_p6)
}
  0x53   :  { %s196_s8 = scalar_lea.hbm %s268_s2, 128 }
  0x54   :  { %p197_p7 = scmp.ne.s32.totalorder %s268_s2, %s196_s8  ;;  %p200_p8 = scmp.lt.u32.totalorder %s196_s8, %s268_s2 }
  0x56   :  { %p202_p9 = pnand %p200_p8, %p197_p7 }
  0x58   :  { %205 = shalt.err (!%p202_p9)
}
  0x59   :  { %116 = dma.vmem_to_hbm [thread:$0]  %s114_s4, 128, %s268_s2, [#allocation4]  }
  0x5a   :  { %210 = dma.done.wait [#allocation4], 128  }
  0x5b   :  { %211 = vsyncadd [#allocation4], 4294967168 }
  0x5c   :  { %120 = vsyncpa [#allocation3], 1 }
  0x5d   :  { %121 = vsyncpa [#allocation6], 1 }
  0x5e   :  { %122 = vsyncpa [#allocation4], 1 }

</bundles_post_ra>
